<compile_context>
chip_gen: v6e
topology: v6e:2x2x1
jax: 0.10.0
libtpu: 0.0.40
codegen_flags: <defaults>
</compile_context>

<pallas_src>
from functools import partial

import jax
import jax.numpy as jnp
from jax import lax
from jax.experimental import pallas as pl
from jax.experimental.pallas import tpu as pltpu

K_SIZE = 3                      # eca_layer default k_size
PAD = (K_SIZE - 1) // 2


# ---------------------------------------------------------------------------
# In-kernel helpers
# ---------------------------------------------------------------------------
def _channel_conv_sigmoid(w_ref, y):
    """sigmoid(Conv1d(1,1,K,pad=(K-1)//2,bias=False) over channels) of y.

    w_ref : SMEM (K,) f32 conv taps
    y     : (C, 1) f32 pooled per-channel means
    returns (C, 1) f32 gate
    """
    C = y.shape[0]
    idx = lax.broadcasted_iota(jnp.int32, y.shape, 0)
    conv = jnp.zeros_like(y)
    for t in range(K_SIZE):
        off = t - PAD                               # out[c] += w[t] * y[c + off]
        if off == 0:
            shifted = y
        else:
            # pltpu.roll requires a non-negative shift; a circular roll by
            # (-off) mod C followed by zeroing the wrapped edge entries is the
            # zero-padded shift y[c + off].
            shifted = pltpu.roll(y, shift=(-off) % C, axis=0)
            if off > 0:
                shifted = jnp.where(idx >= C - off, 0.0, shifted)
            else:
                shifted = jnp.where(idx < -off, 0.0, shifted)
        conv = conv + w_ref[t] * shifted
    return jax.nn.sigmoid(conv)


# ---------------------------------------------------------------------------
# Kernels
# ---------------------------------------------------------------------------
def eca_fused_kernel(w_ref, x_ref, o_ref, *, inv_s):
    """Single-visit ECA for one batch element: mean + conv + sigmoid + scale.

    w_ref : SMEM (K,)      conv taps
    x_ref : VMEM (1, C, S) full per-batch slab
    o_ref : VMEM (1, C, S) output slab
    """
    x = x_ref[0]                                                   # (C, S)
    y = jnp.sum(x.astype(jnp.float32), axis=1, keepdims=True) * inv_s
    g = _channel_conv_sigmoid(w_ref, y).astype(x.dtype)            # (C, 1)
    o_ref[0] = (x * g).astype(o_ref.dtype)


def eca_reduce_kernel(w_ref, x_ref, gate_ref, acc_ref, *, inv_s):
    """Accumulate per-channel sums across S tiles; finalize conv + sigmoid.

    w_ref    : SMEM (K,)        conv taps
    x_ref    : VMEM (1, C, TS)  input tile for one batch element
    gate_ref : VMEM (1, C, 1)   sigmoid gate (written on last spatial tile)
    acc_ref  : VMEM (C, 1)      f32 running per-channel sum (scratch)
    """
    s = pl.program_id(1)

    @pl.when(s == 0)
    def _():
        acc_ref[...] = jnp.zeros_like(acc_ref)

    acc_ref[...] += jnp.sum(x_ref[0].astype(jnp.float32), axis=1, keepdims=True)

    @pl.when(s == pl.num_programs(1) - 1)
    def _():
        y = acc_ref[...] * inv_s                                   # true mean
        gate_ref[0] = _channel_conv_sigmoid(w_ref, y).astype(gate_ref.dtype)


def eca_scale_kernel(gate_ref, x_ref, o_ref):
    """Streaming elementwise scale: o = x * gate (gate broadcast over lanes)."""
    g = gate_ref[0].astype(x_ref.dtype)                            # (C, 1)
    o_ref[0] = (x_ref[0] * g).astype(o_ref.dtype)


# ---------------------------------------------------------------------------
# Wrapper
# ---------------------------------------------------------------------------
def _choose_spatial_tile(S, C, itemsize, max_block_bytes):
    """Largest 128-aligned TS dividing S with C*TS*itemsize <= max_block_bytes.
    S must already be a multiple of 128 (wrapper pads). Minimum 128 lanes."""
    per_lane = max(1, C * itemsize)
    max_lanes = (max_block_bytes // per_lane) // 128 * 128
    max_lanes = int(max(128, max_lanes))
    if S <= max_lanes:
        return S
    for ts in range(max_lanes, 127, -128):
        if S % ts == 0:
            return ts
    return 128


def eca_forward(x, conv_weight, *,
                fuse_slab_bytes=6 << 20,     # fuse when C*S*itemsize <= this
                block_bytes=4 << 20,         # per-block budget, tiled fallback
                vmem_limit_bytes=48 * 1024 * 1024,   # <= physical on v5e/v6e/v7x
                donate_x=False):
    """x: (B, C, D, H, W); conv_weight: (1, 1, K)."""
    B, C, D, H, W = x.shape
    S = D * H * W
    itemsize = jnp.dtype(x.dtype).itemsize
    x3 = x.reshape(B, C, S)
    w = conv_weight.reshape(-1).astype(jnp.float32)                # (K,)
    inv_s = 1.0 / float(S)

    w_spec = pl.BlockSpec(memory_space=pltpu.MemorySpace.SMEM)

    # ---------------- Fused single pass (2x-traffic roofline) ----------------
    if C * S * itemsize <= fuse_slab_bytes:
        out = pl.pallas_call(
            partial(eca_fused_kernel, inv_s=inv_s),
            out_shape=jax.ShapeDtypeStruct((B, C, S), x.dtype),
            grid=(B,),
            in_specs=[w_spec,
                      pl.BlockSpec((1, C, S), lambda b: (b, 0, 0))],
            out_specs=pl.BlockSpec((1, C, S), lambda b: (b, 0, 0)),
            compiler_params=pltpu.CompilerParams(
                dimension_semantics=("parallel",),
                vmem_limit_bytes=vmem_limit_bytes),
            input_output_aliases=({1: 0} if donate_x else {}),
        )(w, x3)
        return out.reshape(B, C, D, H, W)

    # ---------------- Two-pass fallback for large slabs ----------------------
    # Pad S to a lane multiple so every spatial tile is 128-aligned; zero
    # padding does not change the sums (we divide by the true S).
    S_pad = ((S + 127) // 128) * 128
    x3p = x3 if S_pad == S else jnp.pad(x3, ((0, 0), (0, 0), (0, S_pad - S)))
    TS = _choose_spatial_tile(S_pad, C, itemsize, block_bytes)
    n_s = S_pad // TS

    # Pass 1: per-(batch, channel) sigmoid gate, shape (B, C, 1), f32.
    gate = pl.pallas_call(
        partial(eca_reduce_kernel, inv_s=inv_s),
        out_shape=jax.ShapeDtypeStruct((B, C, 1), jnp.float32),
        grid=(B, n_s),
        in_specs=[w_spec,
                  pl.BlockSpec((1, C, TS), lambda b, s: (b, 0, s))],
        out_specs=pl.BlockSpec((1, C, 1), lambda b, s: (b, 0, 0)),
        scratch_shapes=[pltpu.VMEM((C, 1), jnp.float32)],
        compiler_params=pltpu.CompilerParams(
            dimension_semantics=("parallel", "arbitrary"),
            vmem_limit_bytes=vmem_limit_bytes),
    )(w, x3p)

    # Pass 2: pure memory-bound streaming scale in the native dtype.
    out = pl.pallas_call(
        eca_scale_kernel,
        out_shape=jax.ShapeDtypeStruct((B, C, S_pad), x.dtype),
        grid=(B, n_s),
        in_specs=[pl.BlockSpec((1, C, 1), lambda b, s: (b, 0, 0)),
                  pl.BlockSpec((1, C, TS), lambda b, s: (b, 0, s))],
        out_specs=pl.BlockSpec((1, C, TS), lambda b, s: (b, 0, s)),
        compiler_params=pltpu.CompilerParams(
            dimension_semantics=("parallel", "parallel"),
            vmem_limit_bytes=vmem_limit_bytes),
        input_output_aliases=({1: 0} if (donate_x and S_pad == S) else {}),
    )(gate, x3p)

    if S_pad != S:
        out = out[:, :, :S]
    return out.reshape(B, C, D, H, W)


# ---------------------------------------------------------------------------
# Plain-JAX reference (matches the PyTorch forward exactly)
# ---------------------------------------------------------------------------
def eca_ref(x, conv_weight):
    B, C, D, H, W = x.shape
    y = jnp.mean(x, axis=(2, 3, 4))                                # (B, C)
    w = conv_weight.reshape(-1)
    yp = jnp.pad(y, ((0, 0), (PAD, PAD)))
    yc = sum(w[t] * yp[:, t:t + C] for t in range(K_SIZE))         # (B, C)
    g = jax.nn.sigmoid(yc)[:, :, None, None, None]
    return x * g


if __name__ == "__main__":
    key = jax.random.PRNGKey(0)
    kx, kw = jax.random.split(key)

    # Small shapes consistent with the module's forward: (b, c, d, h, w)
    B, C, D, H, W = 2, 8, 4, 8, 8
    x = jax.random.normal(kx, (B, C, D, H, W), dtype=jnp.float32)

    # Deterministic Conv1d(1, 1, 3, bias=False) weight, shape (1, 1, 3)
    conv_weight = jax.random.uniform(
        kw, (1, 1, K_SIZE), dtype=jnp.float32, minval=-0.5, maxval=0.5)

    ref = eca_ref(x, conv_weight)

    # Fused single-pass path (default for this small slab).
    out = jax.block_until_ready(eca_forward(x, conv_weight))
    assert out.shape == x.shape
    err = float(jnp.max(jnp.abs(out - ref)))
    assert err < 1e-5, err

    # Also exercise the tiled two-pass fallback (force tiny tiles so the
    # reduction accumulates across multiple spatial blocks).
    out2 = jax.block_until_ready(
        eca_forward(x, conv_weight, fuse_slab_bytes=0, block_bytes=4096))
    err2 = float(jnp.max(jnp.abs(out2 - ref)))
    assert err2 < 1e-5, err2

    print("KERNEL_OK")
</pallas_src>

<mosaic_0001>
module attributes {stable_mosaic.version = 11 : i64} {
  func.func @eca_fused_kernel(%arg0: i32, %arg1: memref<3xf32, #tpu.memory_space<smem>>, %arg2: memref<1x8x256xf32, #tpu.memory_space<vmem>>, %arg3: memref<1x8x256xf32, #tpu.memory_space<vmem>>) attributes {dimension_semantics = [#tpu.dimension_semantics<parallel>], iteration_bounds = array<i64: 2>, scalar_prefetch = 0 : i64, scratch_operands = 0 : i64, tpu.core_type = #tpu.core_type<tc>, window_params = [{transform_indices = @transform_0, window_bounds = array<i64: 3>}, {transform_indices = @transform_1, window_bounds = array<i64: 1, 8, 256>}, {transform_indices = @transform_2, window_bounds = array<i64: 1, 8, 256>}]} {
    %c0 = arith.constant 0 : index
    %c0_0 = arith.constant 0 : index
    %c0_1 = arith.constant 0 : index
    %0 = vector.load %arg2[%c0, %c0_0, %c0_1] : memref<1x8x256xf32, #tpu.memory_space<vmem>>, vector<1x8x256xf32>
    %1 = vector.shape_cast %0 : vector<1x8x256xf32> to vector<8x256xf32>
    %cst = arith.constant dense<0.000000e+00> : vector<8xf32>
    %2 = vector.multi_reduction <add>, %1, %cst [1] : vector<8x256xf32> to vector<8xf32>
    %3 = vector.shape_cast %2 : vector<8xf32> to vector<8x1xf32>
    %cst_2 = arith.constant 3.906250e-03 : f32
    %4 = vector.broadcast %cst_2 : f32 to vector<8x1xf32>
    %5 = arith.mulf %3, %4 : vector<8x1xf32>
    %6 = tpu.iota {dimensions = array<i32: 0>} : vector<8x1xi32>
    %cst_3 = arith.constant 0.000000e+00 : f32
    %7 = vector.broadcast %cst_3 : f32 to vector<8x1xf32>
    %c1_i32 = arith.constant 1 : i32
    %8 = tpu.dynamic_rotate %5 by %c1_i32 dim 0 : vector<8x1xf32>, i32 -> vector<8x1xf32>
    %c1_i32_4 = arith.constant 1 : i32
    %9 = vector.broadcast %c1_i32_4 : i32 to vector<8x1xi32>
    %10 = arith.cmpi slt, %6, %9 : vector<8x1xi32>
    %cst_5 = arith.constant 0.000000e+00 : f32
    %11 = vector.broadcast %cst_5 : f32 to vector<8x1xf32>
    %12 = arith.select %10, %11, %8 : vector<8x1xi1>, vector<8x1xf32>
    %c0_6 = arith.constant 0 : index
    %13 = memref.load %arg1[%c0_6] : memref<3xf32, #tpu.memory_space<smem>>
    %14 = vector.broadcast %13 : f32 to vector<8x1xf32>
    %15 = arith.mulf %14, %12 : vector<8x1xf32>
    %16 = arith.addf %7, %15 : vector<8x1xf32>
    %c1 = arith.constant 1 : index
    %17 = memref.load %arg1[%c1] : memref<3xf32, #tpu.memory_space<smem>>
    %18 = vector.broadcast %17 : f32 to vector<8x1xf32>
    %19 = arith.mulf %18, %5 : vector<8x1xf32>
    %20 = arith.addf %16, %19 : vector<8x1xf32>
    %c7_i32 = arith.constant 7 : i32
    %21 = tpu.dynamic_rotate %5 by %c7_i32 dim 0 : vector<8x1xf32>, i32 -> vector<8x1xf32>
    %c7_i32_7 = arith.constant 7 : i32
    %22 = vector.broadcast %c7_i32_7 : i32 to vector<8x1xi32>
    %23 = arith.cmpi sge, %6, %22 : vector<8x1xi32>
    %cst_8 = arith.constant 0.000000e+00 : f32
    %24 = vector.broadcast %cst_8 : f32 to vector<8x1xf32>
    %25 = arith.select %23, %24, %21 : vector<8x1xi1>, vector<8x1xf32>
    %c2 = arith.constant 2 : index
    %26 = memref.load %arg1[%c2] : memref<3xf32, #tpu.memory_space<smem>>
    %27 = vector.broadcast %26 : f32 to vector<8x1xf32>
    %28 = arith.mulf %27, %25 : vector<8x1xf32>
    %29 = arith.addf %20, %28 : vector<8x1xf32>
    %30 = arith.negf %29 : vector<8x1xf32>
    %31 = math.exp %30 : vector<8x1xf32>
    %cst_9 = arith.constant 1.000000e+00 : f32
    %32 = vector.broadcast %cst_9 : f32 to vector<8x1xf32>
    %33 = arith.addf %32, %31 : vector<8x1xf32>
    %34 = arith.divf %32, %33 : vector<8x1xf32>
    %35 = vector.broadcast %34 : vector<8x1xf32> to vector<8x256xf32>
    %36 = arith.mulf %1, %35 : vector<8x256xf32>
    %c0_10 = arith.constant 0 : index
    %c0_11 = arith.constant 0 : index
    %c0_12 = arith.constant 0 : index
    %37 = vector.load %arg3[%c0_10, %c0_11, %c0_12] : memref<1x8x256xf32, #tpu.memory_space<vmem>>, vector<1x8x256xf32>
    %38 = vector.shape_cast %37 : vector<1x8x256xf32> to vector<8x256xf32>
    %39 = vector.shape_cast %36 : vector<8x256xf32> to vector<1x8x256xf32>
    tpu.vector_store %arg3[%c0_10, %c0_11, %c0_12], %39 {strides = array<i32>} : memref<1x8x256xf32, #tpu.memory_space<vmem>>, vector<1x8x256xf32>,
    return
  }
  func.func @transform_0(%arg0: i32) -> i32 {
    %c0_i32 = arith.constant 0 : i32
    %c0_i32_0 = arith.constant 0 : i32
    return %c0_i32 : i32
  }
  func.func @transform_1(%arg0: i32) -> (i32, i32, i32) {
    %c0_i32 = arith.constant 0 : i32
    %c0_i32_0 = arith.constant 0 : i32
    %c0_i32_1 = arith.constant 0 : i32
    return %arg0, %c0_i32, %c0_i32_0 : i32, i32, i32
  }
  func.func @transform_2(%arg0: i32) -> (i32, i32, i32) {
    %c0_i32 = arith.constant 0 : i32
    %c0_i32_0 = arith.constant 0 : i32
    %c0_i32_1 = arith.constant 0 : i32
    return %arg0, %c0_i32, %c0_i32_0 : i32, i32, i32
  }
}

</mosaic_0001>

<bundles_post_ra>
// kernel: tpu_custom_call.1
= control target key start
LH: loop header
LB: loop body
LE: loop exit
PB: predicated region body
PF: predicated region fallthrough
CT: control target
= control target key end

     0   :  { %7 = vsyncpa [#allocation5], 0  ;;  %s678_s0 = inlined_call_operand.hbm [shape: f32[3], index: 0, kind: input, shape index: {}]   ;;  %s679_s1 = inlined_call_operand.hbm [shape: f32[2,8,256], index: 1, kind: input, shape index: {}]   ;;  %s680_s2 = inlined_call_operand.hbm [shape: f32[2,8,256], index: 2, kind: output, shape index: {}]  }
   0x1   :  { %8 = vsyncpa [#allocation3], 0 }
   0x2   :  { %10 = vsyncpa [#allocation3 + $0x1], 0 }
   0x3   :  { %11 = vsyncpa [#allocation4], 0 }
   0x4   :  { %13 = vsyncpa [#allocation4 + $0x1], 0  ;;  %s522_s9 = smov 0   ;;  %s524_s10 = smov 0  }
   0x5   :  { %s526_s11 = smov 0   ;;  %s528_s12 = smov 0  }
   0x6 LB: > { %s543_s13 = sadd.s32 4294967295, %s501_s12   ;;  %s310_s14 = sadd.s32 4294967294, %s501_s12   ;;  %s501_s12 = sphi %s528_s12, %s700_s12   ;;  %s497_s11 = sphi %s526_s11, %s699_s11   ;;  %s493_s10 = sphi %s524_s10, %s698_s10   ;;  %s489_s9 = sphi %s522_s9, %s697_s9  }
   0x7   : > { %p60_p0 = scmp.ne.s32.totalorder %s493_s10, %s489_s9  ;;  %p681_p1 = scmp.eq.s32.totalorder %s543_s13, 0 }
   0x8   : > { %p84_p2 = scmp.eq.s32.totalorder %s543_s13, 1  ;;  %p90_p3 = scmp.eq.s32.totalorder %s310_s14, 1 }
   0x9   : > { %p552_p4 = por %p681_p1, %p60_p0  ;;  %p311_p5 = scmp.ge.s32.totalorder %s501_s12, 1 }
   0xa   : > { %p557_p6 = por %p90_p3, %p60_p0  ;;  %p97_p7 = scmp.lt.s32.totalorder %s501_s12, 3 }
   0xb   : > { %s685_s15 = scalar_select %p552_p4, 1, 0 }
   0xc   : > { %s686_s16 = scalar_select %p557_p6, 1, 0 }
   0xd   : > { %p562_p8 = pnand %p311_p5, %p97_p7  ;;  %s568_s18 = sadd.s32 1, %s501_s12  }
   0xe   : > { %s44_s19 = ssub.s32 %s501_s12, %s568_s18  ;;  %s47_s20 = sadd.s32 1, %s497_s11 }
   0xf   : > { %s687_s17 = scalar_select %p562_p8, 1, 0 }
  0x10   : > { %p339_p10 = pneg %p562_p8  ;;  %p45_p12 = scmp.eq.s32.totalorder %s44_s19, 0 }
  0x11   : > { %p54_p13 = scmp.ne.s32.totalorder %s497_s11, %s493_s10  ;;  %p55_p0 = scmp.eq.s32.totalorder %s501_s12, 0 }
  0x12   : > { %p340_p11 = pnand %p339_p10, %p681_p1  ;;  %p352_p3 = scmp.lt.s32.totalorder %s501_s12, 2 }
  0x13   : > { %s503_s21 = smov [#allocation2]   ;;  %p56_p5 = por %p55_p0, %p54_p13 }
  0x14   : > { %342 = dma.hbm_to_smem (!%p340_p11), %s678_s0, 16, %s503_s21, [#allocation5]  }
  0x15   : > { %s585_s24 = scalar_select %p45_p12, %s497_s11, %s47_s20  }
  0x16   : > { %p589_p7 = por %p84_p2, %p54_p13  ;;  %s119_s26 = sand.u32 1, %s497_s11  }
  0x17   : > { %s329_s27 = sshll.u32 %s501_s12, 8  ;;  %s314_s28 = sshll.u32 %s119_s26, 4 }
  0x18   : > { %s688_s25 = scalar_select %p589_p7, 1, 0 }
  0x19   : > { %s598_s3 = scalar_lea.hbm %s679_s1, %s329_s27  ;;  %s123_s4 = scalar_lea.vmem [#allocation6], %s314_s28 }
  0x1a   : > { %s131_s5 = sshll.u32 %s123_s4, 4  ;;  %p600_p10 = pnand %p352_p3, %p56_p5  ;;  %s132_s5 = int_to_ptr.vmem [resolvable:$true] %s131_s5 }
  0x1b   : > { %s120_s7 = scalar_lea.sflag [#allocation3], %s119_s26  ;;  %s405_s8 = scalar_lea.hbm %s598_s3, 256 }
  0x1c   : > { %p406_p2 = scmp.ne.s32.totalorder %s598_s3, %s405_s8  ;;  %p407_p11 = pneg %p600_p10 }
  0x1d   : > { %s410_s20 = scalar_lea.hbm %s679_s1, 512  ;;  %p411_p0 = scmp.lt.s32.totalorder %s598_s3, %s679_s1 }
  0x1e   : > { %p408_p12 = pnand %p407_p11, %p406_p2  ;;  %p412_p3 = scmp.lt.s32.totalorder %s410_s20, %s405_s8 }
  0x20   : > { %p409_p13 = pneg %p408_p12  ;;  %p413_p5 = por %p412_p3, %p411_p0 }
  0x22   : > { %p414_p9 = pnand %p413_p5, %p409_p13 }
  0x24   : > { %417 = shalt.err (!%p414_p9)
}
  0x25   : > { %s418_s23 = scalar_lea.vmem %s132_s5, 256  ;;  %s504_s26 = smov [#allocation6]  }
  0x26   : > { %p419_p1 = scmp.ne.s32.totalorder %s132_s5, %s418_s23  ;;  %s423_s27 = sshll.u32 %s504_s26, 4  ;;  %s424_s27 = int_to_ptr.vmem [resolvable:$false] %s423_s27 }
  0x27   : > { %s425_s28 = scalar_lea.vmem %s424_s27, 512  ;;  %p426_p2 = scmp.lt.s32.totalorder %s132_s5, %s424_s27 }
  0x28   : > { %p421_p6 = pnand %p419_p1, %p407_p11  ;;  %p427_p12 = scmp.lt.s32.totalorder %s425_s28, %s418_s23 }
  0x2a   : > { %p422_p7 = pneg %p421_p6  ;;  %p428_p4 = por %p427_p12, %p426_p2 }
  0x2c   : > { %p429_p8 = pnand %p428_p4, %p422_p7 }
  0x2e   : > { %432 = shalt.err (!%p429_p8)
}
  0x2f   : > { %346 = dma.hbm_to_vmem [thread:$0]  (!%p600_p10), %s598_s3, 256, %s132_s5, %s120_s7  }
  0x30   : > { %p690_p13 = scmp.ne.s32.totalorder %s687_s17, 0 }
  0x31   : > { %p691_p9 = scmp.eq.s32.totalorder (!%p690_p13), %s543_s13, 0 }
  0x32   : > { %140 = sbr.rel (%p690_p13) target bundleno = 385 (0x181), region = 28 }
  0x37   : > { %476 = dma.done.wait (%p691_p9), [#allocation5], 16   ;;  %p692_p1 = pmov %p691_p9 }
  0x38   : > { %s625_s29 = sand.u32 1, %s493_s10   ;;  %p693_p4 = scmp.ne.s32.totalorder %s685_s15, 0 }
  0x39   : > { %478 = vsyncadd (%p692_p1), [#allocation5], 4294967280  ;;  %s319_s30 = sshll.u32 %s625_s29, 4  ;;  %s147_s4 = scalar_lea.sflag [#allocation3], %s625_s29 }
  0x3a   : > { %s150_s3 = scalar_lea.vmem [#allocation6], %s319_s30 }
  0x3b   : > { %480 = dma.done.wait (%p693_p4), %s147_s4, 256  }
  0x3c   : > { %482 = vsyncadd (%p693_p4), %s147_s4, 4294967040 }
  0x3d   : > { %155 = sfence }
  0x3e   : > { %v172_v0 = vld [vmem:[%s150_s3] sm:$0xff]  ;;  %v173_v1 = vld [vmem:[%s150_s3 + $0x8] sm:$0xff]  ;;  %v505_v3 = vmov 0   ;;  %v178_v4 = vlaneseq  ;;  %s183_s17 = sld [smem:[#allocation2]]  ;;  %s330_s15 = sshll.u32 %s543_s13, 8 }
  0x3f   : > { %v174_v2 = vadd.f32 %v173_v1, %v172_v0  ;;  %389 = vset.pattern.permute.xlu0 %v505_v3  ;;  %s321_s5 = sld [smem:[#allocation2 + $0x1]]  ;;  %s171_s7 = scalar_lea.vmem [#allocation7], %s319_s30 }
  0x40   : > { %s322_s6 = sld [smem:[#allocation2 + $0x2]]  ;;  %v179_v5 = vshrl.u32 %v178_v4, 7  ;;  %s228_s8 = sshll.u32 %s171_s7, 4  ;;  %s229_s8 = int_to_ptr.vmem [resolvable:$true] %s228_s8 }
  0x41   : > { %175 = vadd.xlane.f32.xlu0 %v174_v2  ;;  %s641_s20 = scalar_lea.hbm %s680_s2, %s330_s15  ;;  %s214_s21 = scalar_lea.sflag [#allocation4], %s625_s29 }
  0x42   : > { %vm181_vm0 = vcmp.lt.s32.totalorder %v179_v5, 1  ;;  %vm192_vm1 = vcmp.ge.s32.totalorder %v179_v5, 7  ;;  %s433_s22 = scalar_lea.vmem %s229_s8, 256  ;;  %p694_p8 = scmp.ne.s32.totalorder %s688_s25, 0 }
  0x43   : > { %p434_p6 = scmp.ne.s32.totalorder %s229_s8, %s433_s22  ;;  %s506_s13 = smov [#allocation7]  }
  0x44   : > { %v184_v8 = vstv %s183_s17  ;;  %s437_s23 = sshll.u32 %s506_s13, 4  ;;  %s438_s23 = int_to_ptr.vmem [resolvable:$false] %s437_s23 }
  0x45   : > { %v188_v9 = vstv %s321_s5  ;;  %p435_p7 = pnand %p434_p6, %p694_p8  ;;  %s439_s26 = scalar_lea.vmem %s438_s23, 512 }
  0x46   : > { %v195_v12 = vstv %s322_s6  ;;  %p440_p11 = scmp.lt.s32.totalorder %s229_s8, %s438_s23  ;;  %p441_p0 = scmp.lt.s32.totalorder %s439_s26, %s433_s22 }
  0x47   : > { %p436_p10 = pneg %p435_p7 }
  0x48   : > { %p442_p3 = por %p441_p0, %p440_p11 }
  0x4a   : > { %p443_p5 = pnand %p442_p3, %p436_p10 }
  0xca   : > { %v176_v6 = vpop.xlane.xlu0 %175 }
  0xcb   : > { %v177_v7 = vmul.f32 0.00390625, %v176_v6 }
  0xcd   : > { %v180_v10 = vrot.slane %v177_v7, 7  ;;  %v191_v11 = vrot.slane %v177_v7, 1  ;;  %v189_v16 = vmul.f32 %v188_v9, %v177_v7 }
  0xcf   : > { %v182_v13 = vsel %vm181_vm0, 0.0, %v180_v10  ;;  %v193_v14 = vsel %vm192_vm1, 0.0, %v191_v11 }
  0xd0   : > { %v185_v15 = vmul.f32 %v184_v8, %v182_v13  ;;  %v196_v18 = vmul.f32 %v195_v12, %v193_v14 }
  0xd2   : > { %v190_v17 = vadd.f32 %v189_v16, %v185_v15 }
  0xd4   : > { %v197_v19 = vadd.f32 %v196_v18, %v190_v17 }
  0xd6   : > { %v323_v20 = vmul.f32 -1.442695, %v197_v19 }
  0xd8   : > { %390 = vpow2.f32 %v323_v20 }
  0xe5   : > { %v391_v21 = vpop.eup %390 }
  0xe6   : > { %v201_v22 = vadd.f32 1.0, %v391_v21 }
  0xe8   : > { %392 = vrcp.f32 %v201_v22 }
  0xf5   : > { %v393_v23 = vpop.eup %392 }
  0xf6   : > { %206 = vperm.xlu0 %389, %v393_v23  }
 0x171   : > { %v207_v24 = vpop.permute.xlu0 %206 }
 0x172   : > { %v209_v25 = vmul.f32 %v207_v24, %v172_v0  ;;  %v210_v26 = vmul.f32 %v207_v24, %v173_v1 }
 0x174   : > { %211 = vst [vmem:[%s171_s7] sm:$0xff] %v209_v25  ;;  %212 = vst [vmem:[%s171_s7 + $0x8] sm:$0xff] %v210_v26 }
 0x175   : > { %446 = shalt.err (!%p443_p5)
}
 0x176   : > { %s447_s27 = scalar_lea.hbm %s641_s20, 256  ;;  %s451_s30 = scalar_lea.hbm %s680_s2, 512 }
 0x177   : > { %p448_p2 = scmp.ne.s32.totalorder %s641_s20, %s447_s27  ;;  %p452_p9 = scmp.lt.s32.totalorder %s641_s20, %s680_s2 }
 0x178   : > { %p453_p1 = scmp.lt.s32.totalorder %s451_s30, %s447_s27 }
 0x179   : > { %p449_p12 = pnand %p448_p2, %p694_p8 }
 0x17a   : > { %p454_p4 = por %p453_p1, %p452_p9 }
 0x17b   : > { %p450_p13 = pneg %p449_p12 }
 0x17d   : > { %p455_p6 = pnand %p454_p4, %p450_p13 }
 0x17f   : > { %458 = shalt.err (!%p455_p6)
}
 0x180   : > { %337 = dma.vmem_to_hbm [thread:$0]  (%p694_p8), %s229_s8, 256, %s641_s20, %s214_s21  }
 0x181 PF: > { %s240_s17 = sand.u32 1, %s489_s9   ;;  %p695_p7 = scmp.ne.s32.totalorder %s686_s16, 0 }
 0x182   : > { %p696_p10 = scmp.ge.s32.totalorder %s501_s12, 2  ;;  %s241_s5 = scalar_lea.sflag [#allocation4], %s240_s17 }
 0x184   : > { %p348_p11 = pnand %p696_p10, %p695_p7 }
 0x186   : > { %p349_p0 = pneg %p348_p11 }
 0x188   : > { %484 = dma.done.wait (%p349_p0), %s241_s5, 256  }
 0x189   : > { %486 = vsyncadd (%p349_p0), %s241_s5, 4294967040  ;;  %p16_p3 = scmp.ge.s32.totalorder %s568_s18, 4   ;;  %s697_s9 = smov %s493_s10 }
 0x18a   : > { %s698_s10 = smov %s497_s11  ;;  %s699_s11 = smov %s585_s24 }
 0x18b   : > { %s700_s12 = smov %s568_s18  ;;  %18 = sbr.rel (!%p16_p3) target bundleno = 6 (0x6), region = 78 }
 0x190   :  { %246 = vsyncpa [#allocation3], 1 }
 0x191   :  { %248 = vsyncpa [#allocation3 + $0x1], 1 }
 0x192   :  { %249 = vsyncpa [#allocation4], 1 }
 0x193   :  { %251 = vsyncpa [#allocation4 + $0x1], 1 }
 0x194   :  { %252 = vsyncpa [#allocation5], 1 }
 0x195   :  { %254 = vsyncpa [#allocation5 + $0x1], 1 }

</bundles_post_ra>
